<compile_context>
chip_gen: v5e
topology: v5e:2x2
jax: 0.10.0
libtpu: 0.0.40
codegen_flags: <defaults>
</compile_context>

<pallas_src>
import functools
import math

import jax
import jax.numpy as jnp
from jax import lax
from jax.experimental import pallas as pl
from jax.experimental.pallas import tpu as pltpu


# Raise v5e's 16 MiB scoped-VMEM default; still well inside v7x's 64 MiB physical.
_VMEM_LIMIT = 32 * 1024 * 1024


def _sublane_align(dtype):
    """Sublane alignment by dtype packing: 8 for 32-bit, 16 for bf16, 32 for int8/fp8."""
    return max(8, 32 // jnp.dtype(dtype).itemsize)


def _pick_tile(dim, max_tile, aligns):
    """Largest tile <= max_tile that divides `dim`, trying coarser alignments first.

    Falls back to the full dim (a full-extent block is always legal).  The shapes this
    module sees (sequence lengths, channel dims) are highly composite, so the full-dim
    fallback only triggers for small dims where it is also the right answer.
    """
    if dim <= max_tile:
        return dim
    for align in aligns:
        t = (max_tile // align) * align
        while t >= align:
            if dim % t == 0:
                return t
            t -= align
    return dim


# ----------------------------- tiled linear ---------------------------------
def _linear_bias_kernel(x_ref, w_ref, b_ref, o_ref, acc_ref):
    # y = x @ W_t + b ; W_t pre-transposed to (IN, OUT) so the MXU consumes the
    # weight tile directly (no in-kernel transpose / relayout).
    @pl.when(pl.program_id(2) == 0)
    def _():
        acc_ref[...] = jnp.zeros_like(acc_ref)

    acc_ref[...] += jnp.dot(x_ref[...], w_ref[...],
                            preferred_element_type=jnp.float32)

    @pl.when(pl.program_id(2) == pl.num_programs(2) - 1)
    def _():
        o_ref[...] = (acc_ref[...] + b_ref[...].astype(jnp.float32)).astype(o_ref.dtype)


def _linear_nobias_kernel(x_ref, w_ref, o_ref, acc_ref):
    @pl.when(pl.program_id(2) == 0)
    def _():
        acc_ref[...] = jnp.zeros_like(acc_ref)

    acc_ref[...] += jnp.dot(x_ref[...], w_ref[...],
                            preferred_element_type=jnp.float32)

    @pl.when(pl.program_id(2) == pl.num_programs(2) - 1)
    def _():
        o_ref[...] = acc_ref[...].astype(o_ref.dtype)


def linear_pallas(x2d, w_t, b=None, *, tm_max=512, tn_max=256, tk_max=512):
    """x2d: (M, IN), w_t: (IN, OUT) pre-transposed, b: (OUT,) or None -> (M, OUT)."""
    m, in_dim = x2d.shape
    out_dim = w_t.shape[1]

    sub = _sublane_align(x2d.dtype)
    tm = _pick_tile(m, tm_max, (sub,))
    tn = _pick_tile(out_dim, tn_max, (128,))
    tk = _pick_tile(in_dim, tk_max, (128,))
    grid = (m // tm, out_dim // tn, in_dim // tk)

    dsize = jnp.dtype(x2d.dtype).itemsize
    cost = pl.CostEstimate(
        flops=2 * m * out_dim * in_dim,
        transcendentals=0,
        bytes_accessed=(m * in_dim + in_dim * out_dim + m * out_dim) * dsize,
    )
    cparams = pltpu.CompilerParams(
        dimension_semantics=("parallel", "parallel", "arbitrary"),
        vmem_limit_bytes=_VMEM_LIMIT,
    )

    x_spec = pl.BlockSpec((tm, tk), lambda i, j, k: (i, k))
    w_spec = pl.BlockSpec((tk, tn), lambda i, j, k: (k, j))
    o_spec = pl.BlockSpec((tm, tn), lambda i, j, k: (i, j))
    scratch = [pltpu.VMEM((tm, tn), jnp.float32)]
    out_shape = jax.ShapeDtypeStruct((m, out_dim), x2d.dtype)

    if b is None:
        # Bias-free projections (to_q, to_k, to_v): no zero-bias DMA, no epilogue add.
        return pl.pallas_call(
            _linear_nobias_kernel,
            out_shape=out_shape,
            grid_spec=pltpu.PrefetchScalarGridSpec(
                num_scalar_prefetch=0, grid=grid,
                in_specs=[x_spec, w_spec], out_specs=o_spec,
                scratch_shapes=scratch),
            compiler_params=cparams,
            cost_estimate=cost,
        )(x2d, w_t)

    b2d = b.reshape(1, out_dim)
    b_spec = pl.BlockSpec((1, tn), lambda i, j, k: (0, j))
    return pl.pallas_call(
        _linear_bias_kernel,
        out_shape=out_shape,
        grid_spec=pltpu.PrefetchScalarGridSpec(
            num_scalar_prefetch=0, grid=grid,
            in_specs=[x_spec, w_spec, b_spec], out_specs=o_spec,
            scratch_shapes=scratch),
        compiler_params=cparams,
        cost_estimate=cost,
    )(x2d, w_t, b2d)


# ------------------------------- attention -----------------------------------
# Both kernels read Q as (tq, inner) tiles of the to_q output (B, N, inner) and K/V
# as (tk, 2*inner) tiles of the fused to_kv output (B, M, 2*inner), where
# inner = heads * dim_head.  Head h occupies columns [h*dh, (h+1)*dh) (and
# [inner + h*dh, inner + (h+1)*dh) for V), so the head split/merge is pure
# in-VMEM column slicing, and the output is stored as one lane-dense
# (tq, inner) slab.  The softmax scale is already folded into the Q weights.

def _attn_single_kernel(q_ref, kv_ref, o_ref, *, heads, dim_head, inner):
    """Whole context fits one KV tile: plain softmax, no online bookkeeping."""
    q = q_ref[0]                                  # (tq, inner)
    kv = kv_ref[0]                                # (M, 2*inner)
    cols = []
    for h in range(heads):
        lo = h * dim_head
        hi = lo + dim_head
        qh = q[:, lo:hi]
        kh = kv[:, lo:hi]
        vh = kv[:, inner + lo:inner + hi]
        s = lax.dot_general(qh, kh, dimension_numbers=(((1,), (1,)), ((), ())),
                            preferred_element_type=jnp.float32)      # (tq, M)
        s = s - jnp.max(s, axis=-1, keepdims=True)
        p = jnp.exp(s)
        l = jnp.sum(p, axis=-1, keepdims=True)
        oh = jnp.dot(p.astype(vh.dtype), vh, preferred_element_type=jnp.float32)
        cols.append(oh / l)                       # exact division (once per block)
    o_ref[0] = jnp.concatenate(cols, axis=-1).astype(o_ref.dtype)


def _attn_multi_kernel(q_ref, kv_ref, o_ref, m_sc, l_sc, acc_sc,
                       *, heads, dim_head, inner):
    """Multiple KV tiles: flash-style online softmax, f32 m/l/acc scratch."""
    ki = pl.program_id(2)

    @pl.when(ki == 0)
    def _():
        m_sc[...] = jnp.full(m_sc.shape, -jnp.inf, dtype=m_sc.dtype)
        l_sc[...] = jnp.zeros_like(l_sc)
        acc_sc[...] = jnp.zeros_like(acc_sc)

    q = q_ref[0]                                  # (tq, inner), resident across ki
    kv = kv_ref[0]                                # (tk, 2*inner)
    for h in range(heads):
        lo = h * dim_head
        hi = lo + dim_head
        qh = q[:, lo:hi]
        kh = kv[:, lo:hi]
        vh = kv[:, inner + lo:inner + hi]
        s = lax.dot_general(qh, kh, dimension_numbers=(((1,), (1,)), ((), ())),
                            preferred_element_type=jnp.float32)      # (tq, tk)
        m_prev = m_sc[:, h:h + 1]
        m_new = jnp.maximum(m_prev, jnp.max(s, axis=-1, keepdims=True))
        alpha = jnp.exp(m_prev - m_new)
        p = jnp.exp(s - m_new)
        l_sc[:, h:h + 1] = alpha * l_sc[:, h:h + 1] + jnp.sum(p, axis=-1, keepdims=True)
        acc_sc[:, lo:hi] = alpha * acc_sc[:, lo:hi] + jnp.dot(
            p.astype(vh.dtype), vh, preferred_element_type=jnp.float32)
        m_sc[:, h:h + 1] = m_new

    @pl.when(ki == pl.num_programs(2) - 1)
    def _():
        cols = []
        for h in range(heads):
            lo = h * dim_head
            hi = lo + dim_head
            cols.append(acc_sc[:, lo:hi] / l_sc[:, h:h + 1])   # exact division
        o_ref[0] = jnp.concatenate(cols, axis=-1).astype(o_ref.dtype)


def attention_pallas(q_in, kv_in, *, heads, dim_head, tq_max=512, tk_max=512):
    """q_in: (B, N, inner) with the softmax scale folded in; kv_in: (B, M, 2*inner)
    fused [K | V] from the to_kv projection.  Returns (B, N, inner)."""
    b, n, inner = q_in.shape
    _, m, two_inner = kv_in.shape
    assert inner == heads * dim_head and two_inner == 2 * inner

    sub = _sublane_align(q_in.dtype)
    tq = _pick_tile(n, tq_max, (sub,))
    tk = _pick_tile(m, tk_max, (128, sub))
    n_kv = m // tk

    dsize = jnp.dtype(q_in.dtype).itemsize
    bh = b * heads
    cost = pl.CostEstimate(
        flops=4 * bh * n * m * dim_head,
        transcendentals=2 * bh * n * m,
        # Q + O once; fused K/V re-streamed once per q-tile row.
        bytes_accessed=(2 * b * n * inner + (n // tq) * b * m * 2 * inner) * dsize,
    )
    out_shape = jax.ShapeDtypeStruct((b, n, inner), q_in.dtype)

    if n_kv == 1:
        # Typical LDM cross-attention: the whole context is one KV tile.
        # TODO(synk): context lengths that are not lane-aligned (e.g. M=77) run as a
        # full-extent, partially-masked score tile; padding+masking to 128 not implemented.
        kernel = functools.partial(_attn_single_kernel, heads=heads,
                                   dim_head=dim_head, inner=inner)
        return pl.pallas_call(
            kernel,
            out_shape=out_shape,
            grid_spec=pltpu.PrefetchScalarGridSpec(
                num_scalar_prefetch=0,
                grid=(b, n // tq),
                in_specs=[
                    pl.BlockSpec((1, tq, inner), lambda bi, qi: (bi, qi, 0)),
                    pl.BlockSpec((1, m, 2 * inner), lambda bi, qi: (bi, 0, 0)),
                ],
                out_specs=pl.BlockSpec((1, tq, inner), lambda bi, qi: (bi, qi, 0)),
            ),
            compiler_params=pltpu.CompilerParams(
                dimension_semantics=("parallel", "parallel"),
                vmem_limit_bytes=_VMEM_LIMIT),
            cost_estimate=cost,
        )(q_in, kv_in)

    kernel = functools.partial(_attn_multi_kernel, heads=heads,
                               dim_head=dim_head, inner=inner)
    return pl.pallas_call(
        kernel,
        out_shape=out_shape,
        grid_spec=pltpu.PrefetchScalarGridSpec(
            num_scalar_prefetch=0,
            grid=(b, n // tq, n_kv),
            in_specs=[
                pl.BlockSpec((1, tq, inner), lambda bi, qi, ki: (bi, qi, 0)),
                pl.BlockSpec((1, tk, 2 * inner), lambda bi, qi, ki: (bi, ki, 0)),
            ],
            out_specs=pl.BlockSpec((1, tq, inner), lambda bi, qi, ki: (bi, qi, 0)),
            scratch_shapes=[
                pltpu.VMEM((tq, heads), jnp.float32),   # running max (per head column)
                pltpu.VMEM((tq, heads), jnp.float32),   # running denom
                pltpu.VMEM((tq, inner), jnp.float32),   # f32 accumulator (lane-dense)
            ],
        ),
        compiler_params=pltpu.CompilerParams(
            dimension_semantics=("parallel", "parallel", "arbitrary"),
            vmem_limit_bytes=_VMEM_LIMIT),
        cost_estimate=cost,
    )(q_in, kv_in)


# ------------------------------ module wrapper --------------------------------
class CrossAttentionPallas:
    def __init__(self, query_dim, context_dim=None, heads=8, dim_head=64,
                 dropout=0.0, key=None, dtype=jnp.float32):
        inner_dim = dim_head * heads
        context_dim = query_dim if context_dim is None else context_dim
        self.scale = dim_head ** (-0.5)
        self.heads = heads
        self.dim_head = dim_head
        self.inner_dim = inner_dim
        if key is None:
            key = jax.random.PRNGKey(0)
        kq, kk, kv, ko, kb = jax.random.split(key, 5)

        def init(k, out_d, in_d):
            bound = 1.0 / (in_d ** 0.5)
            return jax.random.uniform(k, (out_d, in_d), dtype, -bound, bound)

        # PyTorch nn.Linear weights are (out, in); pre-transpose once so the kernels
        # never transpose weight tiles on the MXU path.
        self.w_q_t = init(kq, inner_dim, query_dim).T               # (q_dim, inner)
        w_k = init(kk, inner_dim, context_dim)
        w_v = init(kv, inner_dim, context_dim)
        # Fused K/V projection: context is read from HBM once, K occupies the first
        # `inner` output columns and V the last `inner`.
        self.w_kv_t = jnp.concatenate([w_k, w_v], axis=0).T         # (ctx_dim, 2*inner)
        self.w_o_t = init(ko, query_dim, inner_dim).T               # (inner, q_dim)
        bound_o = 1.0 / (inner_dim ** 0.5)
        self.b_o = jax.random.uniform(kb, (query_dim,), dtype, -bound_o, bound_o)
        # Fold the softmax scale into the Q weights once (removes the per-KV-step
        # Q*scale multiply and any bf16 rounding of Q*scale).
        self._w_q_scaled = self.w_q_t * jnp.asarray(self.scale, dtype)
        # TODO(synk): to_out dropout is identity at inference (p=0.0); not implemented.

    def __call__(self, x, context=None):
        b, n, dim = x.shape
        context = x if context is None else context
        m = context.shape[1]
        inner = self.inner_dim

        # Projections (bias-free); reshapes below are trailing-dim splits (no HBM pass).
        q_in = linear_pallas(x.reshape(b * n, dim), self._w_q_scaled).reshape(b, n, inner)
        kv_in = linear_pallas(context.reshape(b * m, -1), self.w_kv_t).reshape(b, m, 2 * inner)

        # Head split/merge and K/V de-interleave happen inside the attention kernel.
        hidden = attention_pallas(q_in, kv_in, heads=self.heads, dim_head=self.dim_head)

        out2d = linear_pallas(hidden.reshape(b * n, inner), self.w_o_t, self.b_o)
        return out2d.reshape(b, n, dim)


# ------------------------------ references ------------------------------------
def reference(mod, x, context=None):
    """Pure-jnp re-implementation of the PyTorch forward (softmax in float32)."""
    context = x if context is None else context
    b = x.shape[0]
    inner = mod.inner_dim
    h, dh = mod.heads, mod.dim_head

    q = x @ mod.w_q_t
    kvp = context @ mod.w_kv_t
    k = kvp[..., :inner]
    v = kvp[..., inner:]

    def to_batch(t):
        bb, nn, _ = t.shape
        return t.reshape(bb, nn, h, dh).transpose(0, 2, 1, 3).reshape(bb * h, nn, dh)

    q, k, v = to_batch(q), to_batch(k), to_batch(v)
    s = jnp.einsum("bnd,bmd->bnm", q, k) * mod.scale
    p = jax.nn.softmax(s, axis=-1)
    o = jnp.einsum("bnm,bmd->bnd", p, v)
    o = o.reshape(b, h, -1, dh).transpose(0, 2, 1, 3).reshape(b, -1, inner)
    return o @ mod.w_o_t + mod.b_o


def attention_reference(q_in, kv_in, heads, dim_head):
    """Reference for attention_pallas on already-scaled q_in and fused kv_in."""
    b, n, inner = q_in.shape
    m = kv_in.shape[1]
    qh = q_in.reshape(b, n, heads, dim_head)
    kh = kv_in[..., :inner].reshape(b, m, heads, dim_head)
    vh = kv_in[..., inner:].reshape(b, m, heads, dim_head)
    s = jnp.einsum("bnhd,bmhd->bhnm", qh, kh)
    p = jax.nn.softmax(s, axis=-1)
    return jnp.einsum("bhnm,bmhd->bnhd", p, vh).reshape(b, n, inner)


if __name__ == "__main__":
    # query_dim must equal heads*dim_head so the original module's hidden_states
    # buffer (dim // heads == dim_head) is consistent.
    B, N, HEADS, DIM_HEAD = 2, 8, 2, 16
    QUERY_DIM = HEADS * DIM_HEAD          # 32
    CONTEXT_DIM = 32
    M = 8                                  # context sequence length

    key = jax.random.PRNGKey(0)
    kx, kc, kw = jax.random.split(key, 3)
    x = jax.random.normal(kx, (B, N, QUERY_DIM), jnp.float32)
    ctx = jax.random.normal(kc, (B, M, CONTEXT_DIM), jnp.float32)

    mod = CrossAttentionPallas(QUERY_DIM, context_dim=CONTEXT_DIM,
                               heads=HEADS, dim_head=DIM_HEAD, key=kw)

    out = jax.block_until_ready(mod(x, ctx))
    ref = reference(mod, x, ctx)
    assert out.shape == (B, N, QUERY_DIM)
    assert jnp.allclose(out, ref, atol=2e-3, rtol=2e-3), "module mismatch vs reference"

    # Also exercise the multi-KV-tile online-softmax path (tk < M) directly.
    H2, DH2, N2, M2 = 2, 16, 16, 256
    INNER2 = H2 * DH2
    kq2, kk2 = jax.random.split(jax.random.PRNGKey(1))
    q2 = jax.random.normal(kq2, (1, N2, INNER2), jnp.float32)
    kv2 = jax.random.normal(kk2, (1, M2, 2 * INNER2), jnp.float32)
    out2 = jax.block_until_ready(
        attention_pallas(q2, kv2, heads=H2, dim_head=DH2, tq_max=8, tk_max=128))
    ref2 = attention_reference(q2, kv2, H2, DH2)
    assert jnp.allclose(out2, ref2, atol=2e-3, rtol=2e-3), "online-softmax mismatch"

    print("KERNEL_OK")
</pallas_src>

<mosaic_0001>
module attributes {stable_mosaic.version = 11 : i64} {
  func.func @_linear_nobias_kernel(%arg0: i32, %arg1: i32, %arg2: i32, %arg3: memref<16x32xf32, #tpu.memory_space<vmem>>, %arg4: memref<32x32xf32, #tpu.memory_space<vmem>>, %arg5: memref<16x32xf32, #tpu.memory_space<vmem>>, %arg6: memref<16x32xf32, #tpu.memory_space<vmem>>) attributes {dimension_semantics = [#tpu.dimension_semantics<parallel>, #tpu.dimension_semantics<parallel>, #tpu.dimension_semantics<arbitrary>], iteration_bounds = array<i64: 1, 1, 1>, scalar_prefetch = 0 : i64, scratch_operands = 1 : i64, tpu.core_type = #tpu.core_type<tc>, window_params = [{transform_indices = @transform_0, window_bounds = array<i64: 16, 32>}, {transform_indices = @transform_1, window_bounds = array<i64: 32, 32>}, {transform_indices = @transform_2, window_bounds = array<i64: 16, 32>}]} {
    %c0_i32 = arith.constant 0 : i32
    %0 = arith.cmpi eq, %arg2, %c0_i32 : i32
    %1 = arith.extui %0 : i1 to i32
    %c0_i32_0 = arith.constant 0 : i32
    %2 = arith.cmpi ne, %1, %c0_i32_0 : i32
    scf.if %2 {
      %cst_10 = arith.constant 0.000000e+00 : f32
      %12 = vector.broadcast %cst_10 : f32 to vector<16x32xf32>
      %c0_11 = arith.constant 0 : index
      %c0_12 = arith.constant 0 : index
      %13 = vector.load %arg6[%c0_11, %c0_12] : memref<16x32xf32, #tpu.memory_space<vmem>>, vector<16x32xf32>
      tpu.vector_store %arg6[%c0_11, %c0_12], %12 {strides = array<i32>} : memref<16x32xf32, #tpu.memory_space<vmem>>, vector<16x32xf32>,
    } else {
    }
    %c0 = arith.constant 0 : index
    %c0_1 = arith.constant 0 : index
    %3 = vector.load %arg6[%c0, %c0_1] : memref<16x32xf32, #tpu.memory_space<vmem>>, vector<16x32xf32>
    %c0_2 = arith.constant 0 : index
    %c0_3 = arith.constant 0 : index
    %4 = vector.load %arg3[%c0_2, %c0_3] : memref<16x32xf32, #tpu.memory_space<vmem>>, vector<16x32xf32>
    %c0_4 = arith.constant 0 : index
    %c0_5 = arith.constant 0 : index
    %5 = vector.load %arg4[%c0_4, %c0_5] : memref<32x32xf32, #tpu.memory_space<vmem>>, vector<32x32xf32>
    %cst = arith.constant dense<0.000000e+00> : vector<16x32xf32>
    %6 = tpu.matmul %4, %5, %cst {dimension_numbers = #tpu.dot_dimension_numbers<[1], [0], [0], [1], [0, 0, 1, 1], [], []>} : vector<16x32xf32>, vector<32x32xf32>, vector<16x32xf32> -> vector<16x32xf32>
    %7 = arith.addf %3, %6 : vector<16x32xf32>
    %c0_6 = arith.constant 0 : index
    %c0_7 = arith.constant 0 : index
    %8 = vector.load %arg6[%c0_6, %c0_7] : memref<16x32xf32, #tpu.memory_space<vmem>>, vector<16x32xf32>
    tpu.vector_store %arg6[%c0_6, %c0_7], %7 {strides = array<i32>} : memref<16x32xf32, #tpu.memory_space<vmem>>, vector<16x32xf32>,
    %c0_i32_8 = arith.constant 0 : i32
    %9 = arith.cmpi eq, %arg2, %c0_i32_8 : i32
    %10 = arith.extui %9 : i1 to i32
    %c0_i32_9 = arith.constant 0 : i32
    %11 = arith.cmpi ne, %10, %c0_i32_9 : i32
    scf.if %11 {
      %c0_10 = arith.constant 0 : index
      %c0_11 = arith.constant 0 : index
      %12 = vector.load %arg6[%c0_10, %c0_11] : memref<16x32xf32, #tpu.memory_space<vmem>>, vector<16x32xf32>
      %c0_12 = arith.constant 0 : index
      %c0_13 = arith.constant 0 : index
      %13 = vector.load %arg5[%c0_12, %c0_13] : memref<16x32xf32, #tpu.memory_space<vmem>>, vector<16x32xf32>
      tpu.vector_store %arg5[%c0_12, %c0_13], %12 {strides = array<i32>} : memref<16x32xf32, #tpu.memory_space<vmem>>, vector<16x32xf32>,
    } else {
    }
    return
  }
  func.func @transform_0(%arg0: i32, %arg1: i32, %arg2: i32) -> (i32, i32) {
    %c0_i32 = arith.constant 0 : i32
    return %arg0, %arg2 : i32, i32
  }
  func.func @transform_1(%arg0: i32, %arg1: i32, %arg2: i32) -> (i32, i32) {
    %c0_i32 = arith.constant 0 : i32
    return %arg2, %arg1 : i32, i32
  }
  func.func @transform_2(%arg0: i32, %arg1: i32, %arg2: i32) -> (i32, i32) {
    %c0_i32 = arith.constant 0 : i32
    return %arg0, %arg1 : i32, i32
  }
}

</mosaic_0001>

<bundles_post_ra>
// kernel: tpu_custom_call.1
= control target key start
LH: loop header
LB: loop body
LE: loop exit
PB: predicated region body
PF: predicated region fallthrough
CT: control target
= control target key end

     0   :  { %7 = vsyncpa [#allocation4], 0  ;;  %s257_s0 = inlined_call_operand.hbm [shape: f32[16,32], index: 0, kind: input, shape index: {}]   ;;  %s258_s1 = inlined_call_operand.hbm [shape: f32[32,32], index: 1, kind: input, shape index: {}]   ;;  %s259_s2 = inlined_call_operand.hbm [shape: f32[16,32], index: 2, kind: output, shape index: {}]  }
   0x1   :  { %8 = vsyncpa [#allocation7], 0 }
   0x2   :  { %9 = vsyncpa [#allocation5], 0  ;;  %s14_s11 = sshll.u32 %s257_s0, 4  ;;  %s210_s12 = smov [#allocation3]   ;;  %s15_s11 = int_to_ptr.hbm [resolvable:$true] %s14_s11 }
   0x3   :  { %s16_s13 = sshll.u32 %s210_s12, 4  ;;  %s27_s16 = sshll.u32 %s258_s1, 4  ;;  %s17_s13 = int_to_ptr.vmem [resolvable:$true] %s16_s13  ;;  %s28_s16 = int_to_ptr.hbm [resolvable:$true] %s27_s16 }
   0x4   :  { %s211_s17 = smov 128   ;;  %s212_s18 = smov 8  }
   0x5   :  { %22 = dma.hbm_to_vmem [thread:$0]  %s15_s11, 256, %s17_s13, [#allocation4], %s211_s17, %s211_s17, %s212_s18  }
   0x6   :  { %s213_s19 = smov [#allocation6]  }
   0x7   :  { %s29_s20 = sshll.u32 %s213_s19, 4  ;;  %s30_s20 = int_to_ptr.vmem [resolvable:$true] %s29_s20 }
   0x8   :  { %35 = dma.hbm_to_vmem [thread:$0]  %s28_s16, 512, %s30_s20, [#allocation7], %s211_s17, %s211_s17, %s212_s18  }
   0x9   :  { %204 = dma.done.wait [#allocation4], 256  }
   0xa   :  { %205 = vsyncadd [#allocation4], 4294967040 }
   0xb   :  { %206 = dma.done.wait [#allocation7], 512  }
   0xc   :  { %207 = vsyncadd [#allocation7], 4294966784  ;;  %vm48_vm0 = vcmask 261120   ;;  %v214_v0 = vmov 0.0   ;;  %v58_v1 = vld [vmem:[#allocation6 + $0x18] sm:$0xff]  ;;  %v57_v2 = vld [vmem:[#allocation6 + $0x10] sm:$0xff] }
   0xd   :  { %49 = vst.msk [vmem:[#allocation2] sm:$0xff] %vm48_vm0, %v214_v0  ;;  %78 = vmatpush.msra.mxu0 %v58_v1  ;;  %122 = vmatpush.msra.mxu1 %v58_v1  ;;  %v56_v3 = vld [vmem:[#allocation6 + $0x8] sm:$0xff]  ;;  %v55_v4 = vld [vmem:[#allocation6] sm:$0xff]  ;;  %v53_v5 = vld [vmem:[#allocation3] sm:$0xff]  ;;  %s215_s0 = smov [#allocation8]   ;;  %s106_s23 = sshll.u32 %s259_s2, 4  ;;  %s107_s23 = int_to_ptr.hbm [resolvable:$true] %s106_s23 }
   0xe   :  { %50 = vst.msk [vmem:[#allocation2 + $0x8] sm:$0xff] %vm48_vm0, %v214_v0  ;;  %v54_v6 = vld [vmem:[#allocation3 + $0x8] sm:$0xff]  ;;  %s104_s1 = sshll.u32 %s215_s0, 4  ;;  %s105_s1 = int_to_ptr.vmem [resolvable:$true] %s104_s1 }
   0xf   :  { %79 = vmatpush.msra.mxu0 %v57_v2  ;;  %123 = vmatpush.msra.mxu1 %v57_v2 }
  0x11   :  { %80 = vmatpush.msra.mxu0 %v56_v3  ;;  %124 = vmatpush.msra.mxu1 %v56_v3 }
  0x13   :  { %81 = vmatpush.msra.mxu0 %v55_v4  ;;  %125 = vmatpush.msra.mxu1 %v55_v4 }
  0x14   :  { %120 = vmatmul.msk.f32.vlgmr.msra.gmra.mxu0 %vm48_vm0, %v53_v5  ;;  %121 = vmatmul.msk.f32.vlgmr.msra.gmra.mxu1 %vm48_vm0, %v54_v6  ;;  %v51_v7 = vld [vmem:[#allocation2] sm:$0xff] }
  0x15   :  { %v52_v8 = vld [vmem:[#allocation2 + $0x8] sm:$0xff] }
  0x91   :  { %v83_v9 = vpop.f32.mrf.mxu0  ;;  %v86_v10 = vpop.f32.mrf.mxu1 }
  0x92   :  { %v89_v11 = vadd.f32 %v83_v9, %v51_v7  ;;  %v90_v12 = vadd.f32 %v86_v10, %v52_v8 }
  0x94   :  { %91 = vst.msk [vmem:[#allocation2] sm:$0xff] %vm48_vm0, %v89_v11 }
  0x95   :  { %92 = vst.msk [vmem:[#allocation2 + $0x8] sm:$0xff] %vm48_vm0, %v90_v12 }
  0x9b   :  { %v96_v13 = vld [vmem:[#allocation2] sm:$0xff] }
  0x9c   :  { %v97_v14 = vld [vmem:[#allocation2 + $0x8] sm:$0xff]  ;;  %98 = vst.msk [vmem:[#allocation8] sm:$0xff] %vm48_vm0, %v96_v13 }
  0x9d   :  { %99 = vst.msk [vmem:[#allocation8 + $0x8] sm:$0xff] %vm48_vm0, %v97_v14 }
  0x9e   :  { %112 = dma.vmem_to_hbm [thread:$0]  %s105_s1, 256, %s107_s23, [#allocation5], %s211_s17, %s211_s17, %s212_s18  }
  0x9f   :  { %208 = dma.done.wait [#allocation5], 256  }
  0xa0   :  { %209 = vsyncadd [#allocation5], 4294967040 }
  0xa1   :  { %117 = vsyncpa [#allocation4], 1 }
  0xa2   :  { %118 = vsyncpa [#allocation7], 1 }
  0xa3   :  { %119 = vsyncpa [#allocation5], 1 }

</bundles_post_ra>
